<compile_context>
chip_gen: v7x
topology: tpu7x:2x2x1
jax: 0.10.0
libtpu: 0.0.40
codegen_flags: <defaults>
</compile_context>

<pallas_src>
import functools

import jax
import jax.numpy as jnp
from jax import lax
from jax.experimental import pallas as pl
from jax.experimental.pallas import tpu as pltpu


_VMEM_TILE_BUDGET = 32 * 1024 * 1024   # per-step (double-buffered) tile footprint target
_VMEM_LIMIT_BYTES = 48 * 1024 * 1024   # scoped VMEM limit (< v7x's 64 MiB physical)


def _expansion_kernel(x_ref, w_ref, b_ref, o_ref):
    # x_ref: (tm, K), w_ref: (tn, K)  -- PyTorch Linear layout, contract on K of both
    # b_ref: (1, tn), o_ref: (tm, tn)
    acc = lax.dot_general(
        x_ref[...], w_ref[...],
        dimension_numbers=(((1,), (1,)), ((), ())),
        preferred_element_type=jnp.float32,
    )
    o_ref[...] = (acc + b_ref[...]).astype(o_ref.dtype)


def _expansion_kernel_ksplit(x_ref, w_ref, b_ref, o_ref, acc_ref):
    # Same as above but with the contraction dim split across grid axis 2.
    k = pl.program_id(2)

    @pl.when(k == 0)
    def _():
        acc_ref[...] = jnp.zeros_like(acc_ref)

    acc_ref[...] += lax.dot_general(
        x_ref[...], w_ref[...],
        dimension_numbers=(((1,), (1,)), ((), ())),
        preferred_element_type=jnp.float32,
    )

    @pl.when(k == pl.num_programs(2) - 1)
    def _():
        o_ref[...] = (acc_ref[...] + b_ref[...]).astype(o_ref.dtype)


def _footprint(tm, tk, tn, itemsize):
    # Double-buffered x, w, bias and out tiles.
    return 2 * itemsize * (tm * tk + tn * tk + tn + tm * tn)


def _select_tiles(M, in_size, n_out, itemsize):
    """Return (tm, tk, tn).  tk == in_size means no K split (single MXU pass,
    no accumulator scratch).  Prefers the tallest row tile, then the widest
    (lane-dense) column tile, subject to the per-step VMEM budget."""
    m_pad8 = ((M + 7) // 8) * 8

    tn_opts = {n_out}
    if n_out % 128 == 0:
        for t in (4096, 2048, 1024, 512, 256, 128):
            if n_out % t == 0:
                tn_opts.add(t)
    tn_opts = sorted(tn_opts, reverse=True)

    tm_opts = [t for t in (1024, 512, 256, 128, 64, 32, 16, 8) if t <= m_pad8]
    if m_pad8 <= 1024 and m_pad8 not in tm_opts:
        tm_opts.insert(0, m_pad8)          # single row-tile covers everything
    if not tm_opts:
        tm_opts = [1024]

    # Pass 1: full K (preferred).
    for tm in tm_opts:
        for tn in tn_opts:
            if _footprint(tm, in_size, tn, itemsize) <= _VMEM_TILE_BUDGET:
                return tm, in_size, tn

    # Pass 2: split K (only when lane-aligned) + f32 accumulator scratch.
    if in_size % 128 == 0 and in_size > 128:
        tk_opts = [t for t in (4096, 2048, 1024, 512, 256, 128) if in_size % t == 0]
        for tm in tm_opts:
            for tn in tn_opts:
                for tk in tk_opts:
                    fp = _footprint(tm, tk, tn, itemsize) + 4 * tm * tn
                    if fp <= _VMEM_TILE_BUDGET:
                        return tm, tk, tn

    # Last resort: smallest row tile, narrowest column tile, full K.
    return min(tm_opts), in_size, tn_opts[-1]


@functools.partial(jax.jit, static_argnames=("tau",))
def expansion_layer(inputs, weight, bias, *, tau):
    """inputs: (..., seq, input_size)
    weight: (tau*input_size, input_size)   -- PyTorch nn.Linear convention
    bias:   (tau*input_size,)
    returns (..., seq*tau, input_size)
    """
    *lead, seq, in_size = inputs.shape
    n_out = tau * in_size
    assert weight.shape == (n_out, in_size)
    assert bias.shape == (n_out,)

    # Flatten all leading dims + seq into rows.
    x2d = inputs.reshape(-1, in_size)
    M = x2d.shape[0]
    itemsize = jnp.dtype(inputs.dtype).itemsize

    tm, tk, tn = _select_tiles(M, in_size, n_out, itemsize)
    n_blocks = n_out // tn
    k_blocks = in_size // tk

    # Ensure >=2 parallel grid steps when possible so v7x's two TensorCores both work.
    if pl.cdiv(M, tm) * n_blocks < 2 and tm > 8:
        tm = min(tm, max(8, ((pl.cdiv(M, 2) + 7) // 8) * 8))

    m_blocks = pl.cdiv(M, tm)
    M_pad = m_blocks * tm
    if M_pad != M:
        x2d = jnp.pad(x2d, ((0, M_pad - M), (0, 0)))  # zero rows; sliced off below

    b2d = bias.reshape(1, n_out)

    cost = pl.CostEstimate(
        flops=2 * M * in_size * n_out,
        transcendentals=0,
        bytes_accessed=itemsize * (M * in_size + n_out * in_size + n_out + M * n_out),
    )

    if k_blocks == 1:
        grid_spec = pltpu.PrefetchScalarGridSpec(
            num_scalar_prefetch=0,
            grid=(m_blocks, n_blocks),
            in_specs=[
                pl.BlockSpec((tm, in_size), lambda i, j: (i, 0)),   # x rows
                pl.BlockSpec((tn, in_size), lambda i, j: (j, 0)),   # W rows (no transpose)
                pl.BlockSpec((1, tn), lambda i, j: (0, j)),         # bias slice
            ],
            out_specs=pl.BlockSpec((tm, tn), lambda i, j: (i, j)),
        )
        kernel = _expansion_kernel
        dim_sem = ("parallel", "parallel")
    else:
        grid_spec = pltpu.PrefetchScalarGridSpec(
            num_scalar_prefetch=0,
            grid=(m_blocks, n_blocks, k_blocks),
            in_specs=[
                pl.BlockSpec((tm, tk), lambda i, j, kk: (i, kk)),   # x rows, K slab
                pl.BlockSpec((tn, tk), lambda i, j, kk: (j, kk)),   # W rows, K slab
                pl.BlockSpec((1, tn), lambda i, j, kk: (0, j)),     # bias slice
            ],
            out_specs=pl.BlockSpec((tm, tn), lambda i, j, kk: (i, j)),
            scratch_shapes=[pltpu.VMEM((tm, tn), jnp.float32)],
        )
        kernel = _expansion_kernel_ksplit
        dim_sem = ("parallel", "parallel", "arbitrary")

    out2d = pl.pallas_call(
        kernel,
        out_shape=jax.ShapeDtypeStruct((M_pad, n_out), inputs.dtype),
        grid_spec=grid_spec,
        compiler_params=pltpu.CompilerParams(
            dimension_semantics=dim_sem,
            vmem_limit_bytes=_VMEM_LIMIT_BYTES,
        ),
        cost_estimate=cost,
    )(x2d, weight, b2d)

    if M_pad != M:
        out2d = out2d[:M]

    # (..., seq, tau*input_size) -> (..., seq*tau, input_size)  (row-major reshape,
    # identical semantics to torch.reshape)
    return out2d.reshape(*lead, seq * tau, in_size)


if __name__ == "__main__":
    # Small shapes consistent with the module's forward.
    batch, seq, input_size, tau = 2, 8, 32, 4

    key = jax.random.PRNGKey(0)
    kx, kw, kb = jax.random.split(key, 3)

    x = jax.random.normal(kx, (batch, seq, input_size), dtype=jnp.float32)
    # Deterministic "Linear" parameters (PyTorch shape conventions).
    weight = (jax.random.normal(kw, (tau * input_size, input_size), dtype=jnp.float32)
              * (1.0 / jnp.sqrt(input_size)))
    bias = jax.random.normal(kb, (tau * input_size,), dtype=jnp.float32) * 0.01
    # TODO(synk): nn.Dropout is a no-op in eval mode / p=0.0, so it is omitted.

    out = expansion_layer(x, weight, bias, tau=tau)
    out = jax.block_until_ready(out)

    # Silent correctness check against a pure-JAX reference.
    ref = (x @ weight.T + bias).reshape(batch, seq * tau, input_size)
    assert out.shape == (batch, seq * tau, input_size)
    assert jnp.allclose(out, ref, atol=1e-5, rtol=1e-5)

    print("KERNEL_OK")
</pallas_src>

<mosaic_0001>
module attributes {stable_mosaic.version = 11 : i64} {
  func.func @_expansion_kernel(%arg0: i32, %arg1: i32, %arg2: memref<8x32xf32, #tpu.memory_space<vmem>>, %arg3: memref<128x32xf32, #tpu.memory_space<vmem>>, %arg4: memref<1x128xf32, #tpu.memory_space<vmem>>, %arg5: memref<8x128xf32, #tpu.memory_space<vmem>>) attributes {dimension_semantics = [#tpu.dimension_semantics<parallel>, #tpu.dimension_semantics<parallel>], iteration_bounds = array<i64: 2, 1>, scalar_prefetch = 0 : i64, scratch_operands = 0 : i64, tpu.core_type = #tpu.core_type<tc>, window_params = [{transform_indices = @transform_0, window_bounds = array<i64: 8, 32>}, {transform_indices = @transform_1, window_bounds = array<i64: 128, 32>}, {transform_indices = @transform_2, window_bounds = array<i64: 1, 128>}, {transform_indices = @transform_3, window_bounds = array<i64: 8, 128>}]} {
    %c0 = arith.constant 0 : index
    %c0_0 = arith.constant 0 : index
    %0 = vector.load %arg2[%c0, %c0_0] : memref<8x32xf32, #tpu.memory_space<vmem>>, vector<8x32xf32>
    %c0_1 = arith.constant 0 : index
    %c0_2 = arith.constant 0 : index
    %1 = vector.load %arg3[%c0_1, %c0_2] : memref<128x32xf32, #tpu.memory_space<vmem>>, vector<128x32xf32>
    %cst = arith.constant dense<0.000000e+00> : vector<8x128xf32>
    %2 = tpu.matmul %0, %1, %cst {dimension_numbers = #tpu.dot_dimension_numbers<[1], [1], [0], [0], [0, 0, 1, 0], [], []>} : vector<8x32xf32>, vector<128x32xf32>, vector<8x128xf32> -> vector<8x128xf32>
    %c0_3 = arith.constant 0 : index
    %c0_4 = arith.constant 0 : index
    %3 = vector.load %arg4[%c0_3, %c0_4] : memref<1x128xf32, #tpu.memory_space<vmem>>, vector<1x128xf32>
    %4 = vector.broadcast %3 : vector<1x128xf32> to vector<8x128xf32>
    %5 = arith.addf %2, %4 : vector<8x128xf32>
    %c0_5 = arith.constant 0 : index
    %c0_6 = arith.constant 0 : index
    %6 = vector.load %arg5[%c0_5, %c0_6] : memref<8x128xf32, #tpu.memory_space<vmem>>, vector<8x128xf32>
    tpu.vector_store %arg5[%c0_5, %c0_6], %5 {strides = array<i32>} : memref<8x128xf32, #tpu.memory_space<vmem>>, vector<8x128xf32>,
    return
  }
  func.func @transform_0(%arg0: i32, %arg1: i32) -> (i32, i32) {
    %c0_i32 = arith.constant 0 : i32
    %c0_i32_0 = arith.constant 0 : i32
    return %arg0, %c0_i32 : i32, i32
  }
  func.func @transform_1(%arg0: i32, %arg1: i32) -> (i32, i32) {
    %c0_i32 = arith.constant 0 : i32
    %c0_i32_0 = arith.constant 0 : i32
    return %arg1, %c0_i32 : i32, i32
  }
  func.func @transform_2(%arg0: i32, %arg1: i32) -> (i32, i32) {
    %c0_i32 = arith.constant 0 : i32
    %c0_i32_0 = arith.constant 0 : i32
    return %c0_i32, %arg1 : i32, i32
  }
  func.func @transform_3(%arg0: i32, %arg1: i32) -> (i32, i32) {
    %c0_i32 = arith.constant 0 : i32
    return %arg0, %arg1 : i32, i32
  }
}

</mosaic_0001>

<bundles_post_ra>
// kernel: expansion_layer.1
= control target key start
LH: loop header
LB: loop body
LE: loop exit
PB: predicated region body
PF: predicated region fallthrough
CT: control target
= control target key end

     0   :  { %s655_s12 = smov 0   ;;  %s657_s13 = smov 0   ;;  %s766_s0 = inlined_call_operand.vmem [shape: f32[16,32], index: 0, kind: input, shape index: {}]   ;;  %s767_s1 = inlined_call_operand.vmem [shape: f32[128,32], index: 1, kind: input, shape index: {}]   ;;  %s768_s2 = inlined_call_operand.vmem [shape: f32[1,128], index: 2, kind: input, shape index: {}]   ;;  %s769_s3 = inlined_call_operand.vmem [shape: f32[16,128], index: 3, kind: output, shape index: {}]  }
   0x1   :  { %s659_s14 = smov 0  }
   0x2 LB: > { %s25_s15 = sadd.s32 1, %s626_s13  ;;  %p474_p0 = scmp.ge.s32.totalorder %s630_s14, 1  ;;  %s630_s14 = sphi %s659_s14, %s13_s14   ;;  %s626_s13 = sphi %s657_s13, %s773_s13   ;;  %s622_s12 = sphi %s655_s12, %s772_s12  }
   0x3   : > { %p27_p1 = scmp.ge.s32.totalorder %s25_s15, 2  ;;  %p169_p2 = scmp.lt.s32.totalorder %s630_s14, 3 }
   0x5   : > { %s775_s15 = smov (%p27_p1, %s25_s15), 0  ;;  %p170_p3 = pnand %p474_p0, %p169_p2 }
   0x6   : > { %v223_v0 = vld [vmem:[%s767_s1] sm:$0xff] (!%p170_p3)  ;;  %v224_v1 = vld [vmem:[%s767_s1 + $0x8] sm:$0xff] (!%p170_p3)  ;;  %vm246_vm0 = vcmask (!%p170_p3), 261120   ;;  %v632_v2 = vmov (!%p170_p3), 0.0|0.0   ;;  %vm633_vm2 = vmmov (!%p170_p3), 0   ;;  %v634_v5 = vmov (!%p170_p3), 0.0  }
   0x7   : > { %173 = sbr.rel (%p170_p3) target bundleno = 287 (0x11f), region = 32  ;;  %549 = vmatprep.subr.bf16.mxu0 (!%p170_p3), %v632_v2  ;;  %v550_v3 = vpack.c.bf16 (!%p170_p3), %v224_v1, %v223_v0  ;;  %vm683_vm1 = vmpackc.low (!%p170_p3), %vm246_vm0, %vm246_vm0  ;;  %546 = vmatprep.mubr.msk.f32.mxu0 (!%p170_p3), %vm633_vm2, %v634_v5  ;;  %v225_v6 = vld [vmem:[%s767_s1 + $0x10] sm:$0xff] (!%p170_p3)  ;;  %v226_v7 = vld [vmem:[%s767_s1 + $0x18] sm:$0xff] (!%p170_p3)  ;;  %p202_p4 = scmp.lt.s32.totalorder (!%p170_p3), %s622_s12, 1 }
   0x8   : > { %v554_v8 = vpack.c.bf16 (!%p170_p3), %v226_v7, %v225_v6  ;;  %v227_v9 = vld [vmem:[%s767_s1 + $0x20] sm:$0xff] (!%p170_p3)  ;;  %v228_v10 = vld [vmem:[%s767_s1 + $0x28] sm:$0xff] (!%p170_p3)  ;;  %v229_v12 = vld [vmem:[%s767_s1 + $0x30] sm:$0xff] (!%p170_p3) }
   0x9   : > { %552 = vmatpush3.bf16.xpose.msk.msra.mxu0 (!%p170_p3), %vm683_vm1, %v550_v3  ;;  %v558_v11 = vpack.c.bf16 (!%p170_p3), %v228_v10, %v227_v9  ;;  %v230_v13 = vld [vmem:[%s767_s1 + $0x38] sm:$0xff] (!%p170_p3)  ;;  %v231_v15 = vld [vmem:[%s767_s1 + $0x40] sm:$0xff] (!%p170_p3)  ;;  %v232_v16 = vld [vmem:[%s767_s1 + $0x48] sm:$0xff] (!%p170_p3) }
   0xa   : > { %553 = vmatprep.subr.bf16.mxu0 (!%p170_p3), %v632_v2  ;;  %v562_v14 = vpack.c.bf16 (!%p170_p3), %v230_v13, %v229_v12  ;;  %v566_v17 = vpack.c.bf16 (!%p170_p3), %v232_v16, %v231_v15  ;;  %v233_v18 = vld [vmem:[%s767_s1 + $0x50] sm:$0xff] (!%p170_p3)  ;;  %v234_v19 = vld [vmem:[%s767_s1 + $0x58] sm:$0xff] (!%p170_p3)  ;;  %v235_v21 = vld [vmem:[%s767_s1 + $0x60] sm:$0xff] (!%p170_p3) }
   0xb   : > { %v570_v20 = vpack.c.bf16 (!%p170_p3), %v234_v19, %v233_v18  ;;  %v236_v22 = vld [vmem:[%s767_s1 + $0x68] sm:$0xff] (!%p170_p3)  ;;  %v237_v24 = vld [vmem:[%s767_s1 + $0x70] sm:$0xff] (!%p170_p3)  ;;  %v238_v25 = vld [vmem:[%s767_s1 + $0x78] sm:$0xff] (!%p170_p3) }
   0xc   : > { %v574_v23 = vpack.c.bf16 (!%p170_p3), %v236_v22, %v235_v21  ;;  %v578_v26 = vpack.c.bf16 (!%p170_p3), %v238_v25, %v237_v24  ;;  %v477_v28 = vld [vmem:[%s768_s2] ss:$0 sm:$0xff] (!%p170_p3) }
   0xe   : > { %s777_s12 = smov (!%p202_p4, %s622_s12), 1 }
   0xf   : > { %s475_s25 = sshll.u32 %s777_s12, 3 }
  0x10   : > { %s205_s28 = scalar_lea.vmem %s766_s0, %s475_s25  ;;  %s221_s6 = scalar_lea.vmem %s769_s3, %s475_s25 }
  0x11   : > { %556 = vmatpush3.bf16.xpose.msk.msra.mxu0 %vm683_vm1, %v554_v8  ;;  %v222_v27 = vld [vmem:[%s205_s28] sm:$0xff] }
  0x12   : > { %557 = vmatprep.subr.bf16.mxu0 %v632_v2 }
  0x19   : > { %560 = vmatpush3.bf16.xpose.msk.msra.mxu0 %vm683_vm1, %v558_v11 }
  0x1a   : > { %561 = vmatprep.subr.bf16.mxu0 %v632_v2 }
  0x21   : > { %564 = vmatpush3.bf16.xpose.msk.msra.mxu0 %vm683_vm1, %v562_v14 }
  0x22   : > { %565 = vmatprep.subr.bf16.mxu0 %v632_v2 }
  0x29   : > { %568 = vmatpush3.bf16.xpose.msk.msra.mxu0 %vm683_vm1, %v566_v17 }
  0x2a   : > { %569 = vmatprep.subr.bf16.mxu0 %v632_v2 }
  0x31   : > { %572 = vmatpush3.bf16.xpose.msk.msra.mxu0 %vm683_vm1, %v570_v20 }
  0x32   : > { %573 = vmatprep.subr.bf16.mxu0 %v632_v2 }
  0x39   : > { %576 = vmatpush3.bf16.xpose.msk.msra.mxu0 %vm683_vm1, %v574_v23 }
  0x3a   : > { %577 = vmatprep.subr.bf16.mxu0 %v632_v2 }
  0x41   : > { %580 = vmatpush3.bf16.xpose.msk.msra.mxu0 %vm683_vm1, %v578_v26 }
  0x48   : > { %547 = vmatmul.mubr.msk.f32.vlgmr.msra.gmra.mrb[0].mxu0 %vm246_vm0, %v222_v27 }
 0x11b   : > { %v364_v29 = vpop.f32.mrb[0].mxu0 }
 0x11c   : > { %v365_v30 = vadd.f32 %v477_v28, %v364_v29  ;;  %v548_v31 = vpop.f32.mrb[1].mxu0 }
 0x11e   : > { %368 = vst [vmem:[%s221_s6] sm:$0xff] %v365_v30 }
 0x11f PF: > { %s13_s14 = sadd.s32 1, %s630_s14   ;;  %s772_s12 = smov %s626_s13 }
 0x120   : > { %p10_p5 = scmp.ge.s32.totalorder %s13_s14, 4   ;;  %s773_s13 = smov %s775_s15 }
 0x122   :  { %12 = sbr.rel (!%p10_p5) target bundleno = 2 (0x2), region = 68 }

</bundles_post_ra>
